<compile_context>
chip_gen: v5e
topology: v5e:2x2
jax: 0.10.0
libtpu: 0.0.40
codegen_flags: <defaults>
</compile_context>

<pallas_src>
import jax
import jax.numpy as jnp
from jax.experimental import pallas as pl
from jax.experimental.pallas import tpu as pltpu


def _make_autoencoder_kernel(approx_hidden_sigmoid: bool):
    def kernel(x_ref, wg_t_ref, bg_ref, wh_t_ref, bh_ref, o_ref):
        w_dtype = wg_t_ref.dtype
        x = x_ref[...].astype(w_dtype)                               # (TB, Q)
        h = jnp.dot(x, wg_t_ref[...],                                # (TB, kp)
                    preferred_element_type=jnp.float32) + bg_ref[...]
        if approx_hidden_sigmoid:
            # exp and approximate reciprocal both issue on the EUP slot,
            # freeing VALU slots (only used on the low-precision path).
            h = pl.reciprocal(1.0 + jnp.exp(-h), approx=True)
        else:
            h = jax.nn.sigmoid(h)
        y = jnp.dot(h.astype(w_dtype), wh_t_ref[...],                # (TB, Q)
                    preferred_element_type=jnp.float32) + bh_ref[...]
        o_ref[...] = jax.nn.sigmoid(y).astype(o_ref.dtype)
    return kernel


def prepare_params(wg, bg, wh, bh, *, param_dtype=jnp.float32):
    """One-time prep: transpose weights and zero-pad the hidden dim to a
    multiple of 128 (lane aligned). Padded wh_t rows are ZERO so the phantom
    sigmoid(0)=0.5 hidden units contribute nothing. Weights may optionally be
    stored in bf16 (MXU-native); biases stay f32 (VPU/EUP math stays f32)."""
    k, Q = wg.shape
    kp = ((k + 127) // 128) * 128
    wg_t = jnp.zeros((Q, kp), jnp.float32).at[:, :k].set(jnp.transpose(wg))
    wh_t = jnp.zeros((kp, Q), jnp.float32).at[:k, :].set(jnp.transpose(wh))
    bg2 = jnp.zeros((1, kp), jnp.float32).at[:, :k].set(bg)
    bh2 = bh.reshape(1, Q).astype(jnp.float32)
    return wg_t.astype(param_dtype), bg2, wh_t.astype(param_dtype), bh2


def _choose_batch_tile(B, Q, kp, *, tb_max=2048, vmem_budget_bytes=40 << 20):
    """Batch tile: whole batch when tiny (latency-bound anyway); otherwise at
    least 2 grid steps (so v7x's two TensorCores both get work), capped at
    tb_max and at what fits comfortably in VMEM with double-buffered x / out."""
    if B <= 256:
        return B
    per_row = 2 * 4 * Q + 2 * 4 * Q + 4 * kp            # 2x-buffered x, out + hidden
    weights = 2 * 4 * Q * kp + 4 * (kp + Q)             # resident weights + biases
    fit = max(8, ((vmem_budget_bytes - weights) // per_row) // 8 * 8)
    half = ((pl.cdiv(B, 2) + 7) // 8) * 8                # >= 2 grid steps
    return int(min(tb_max, fit, half))


def autoencoder_forward(x, params, *, tb_max=2048, approx_hidden_sigmoid=None):
    """out = sigmoid(sigmoid(x @ Wg^T + bg) @ Wh^T + bh).  x: (B, Q) float32.
    params: output of prepare_params (pre-transposed, hidden-dim padded)."""
    wg_t, bg2, wh_t, bh2 = params
    B, Q = x.shape
    kp = wg_t.shape[1]
    if approx_hidden_sigmoid is None:
        approx_hidden_sigmoid = (wg_t.dtype == jnp.bfloat16)

    TB = _choose_batch_tile(B, Q, kp, tb_max=tb_max)
    grid = (pl.cdiv(B, TB),)          # ragged last block handled by Pallas

    cost = pl.CostEstimate(
        flops=2 * 2 * B * Q * kp,                        # two matmuls
        transcendentals=B * (kp + Q),                    # two sigmoids
        bytes_accessed=(x.dtype.itemsize * B * Q + 4 * B * Q
                        + wg_t.dtype.itemsize * 2 * Q * kp + 4 * (kp + Q)),
    )

    return pl.pallas_call(
        _make_autoencoder_kernel(approx_hidden_sigmoid),
        out_shape=jax.ShapeDtypeStruct((B, Q), jnp.float32),
        grid=grid,
        in_specs=[
            pl.BlockSpec((TB, Q), lambda i: (i, 0)),     # x: tiled over batch
            pl.BlockSpec((Q, kp), lambda i: (0, 0)),     # weights: VMEM-resident
            pl.BlockSpec((1, kp), lambda i: (0, 0)),
            pl.BlockSpec((kp, Q), lambda i: (0, 0)),
            pl.BlockSpec((1, Q), lambda i: (0, 0)),
        ],
        out_specs=pl.BlockSpec((TB, Q), lambda i: (i, 0)),
        compiler_params=pltpu.CompilerParams(
            dimension_semantics=("parallel",),           # v7x: shard batch over 2 TCs
            vmem_limit_bytes=48 << 20,                   # safe on v5e/v6e/v7x
        ),
        cost_estimate=cost,
    )(x, wg_t, bg2, wh_t, bh2)


def init_autoencoder_params(key, num_question, k=100):
    """Deterministic init mirroring nn.Linear's U(-1/sqrt(fan_in), 1/sqrt(fan_in))."""
    k1, k2, k3, k4 = jax.random.split(key, 4)
    bound_g = 1.0 / jnp.sqrt(jnp.float32(num_question))
    bound_h = 1.0 / jnp.sqrt(jnp.float32(k))
    wg = jax.random.uniform(k1, (k, num_question), jnp.float32, -bound_g, bound_g)
    bg = jax.random.uniform(k2, (k,), jnp.float32, -bound_g, bound_g)
    wh = jax.random.uniform(k3, (num_question, k), jnp.float32, -bound_h, bound_h)
    bh = jax.random.uniform(k4, (num_question,), jnp.float32, -bound_h, bound_h)
    return wg, bg, wh, bh


def _reference(x, wg, bg, wh, bh):
    return jax.nn.sigmoid(jax.nn.sigmoid(x @ wg.T + bg) @ wh.T + bh)


# TODO(synk): get_weight_norm() is a trivial host-side reduction (||Wg||^2 + ||Wh||^2);
# not worth a Pallas kernel, compute it with jnp on the unpadded weights if needed.

if __name__ == "__main__":
    num_question = 256
    k = 100

    key = jax.random.PRNGKey(0)
    kx, kparam, kx2 = jax.random.split(key, 3)
    wg, bg, wh, bh = init_autoencoder_params(kparam, num_question, k)

    # Default (f32) path — matches the PyTorch forward to tight tolerance.
    params_f32 = prepare_params(wg, bg, wh, bh)

    # Small batch (matches original module usage: one user-vector batch).
    batch = 8
    x = jax.random.uniform(kx, (batch, num_question), jnp.float32)
    out = jax.block_until_ready(autoencoder_forward(x, params_f32))
    ref = _reference(x, wg, bg, wh, bh)
    assert out.shape == (batch, num_question)
    assert jnp.allclose(out, ref, atol=1e-5, rtol=1e-5)

    # Larger, non-tile-divisible batch: grid of 2 steps + ragged last block
    # (no wrapper-side pad of x, no out[:B] slice copy).
    big = 1000
    xb = jax.random.uniform(kx2, (big, num_question), jnp.float32)
    outb = jax.block_until_ready(autoencoder_forward(xb, params_f32))
    refb = _reference(xb, wg, bg, wh, bh)
    assert outb.shape == (big, num_question)
    assert jnp.allclose(outb, refb, atol=1e-5, rtol=1e-5)

    # Optional low-precision fast path: bf16 MXU operands + approx hidden sigmoid.
    params_bf16 = prepare_params(wg, bg, wh, bh, param_dtype=jnp.bfloat16)
    outf = jax.block_until_ready(autoencoder_forward(xb, params_bf16))
    assert outf.shape == (big, num_question)
    assert jnp.allclose(outf, refb, atol=5e-2, rtol=0)

    print("KERNEL_OK")
</pallas_src>

<mosaic_0001>
module attributes {stable_mosaic.version = 11 : i64} {
  func.func @kernel(%arg0: i32, %arg1: memref<8x256xf32, #tpu.memory_space<vmem>>, %arg2: memref<256x128xf32, #tpu.memory_space<vmem>>, %arg3: memref<1x128xf32, #tpu.memory_space<vmem>>, %arg4: memref<128x256xf32, #tpu.memory_space<vmem>>, %arg5: memref<1x256xf32, #tpu.memory_space<vmem>>, %arg6: memref<8x256xf32, #tpu.memory_space<vmem>>) attributes {dimension_semantics = [#tpu.dimension_semantics<parallel>], iteration_bounds = array<i64: 1>, scalar_prefetch = 0 : i64, scratch_operands = 0 : i64, tpu.core_type = #tpu.core_type<tc>, window_params = [{transform_indices = @transform_0, window_bounds = array<i64: 8, 256>}, {pipeline_mode = #tpu.pipeline_mode<synchronous>, transform_indices = @transform_1, window_bounds = array<i64: 256, 128>}, {pipeline_mode = #tpu.pipeline_mode<synchronous>, transform_indices = @transform_2, window_bounds = array<i64: 1, 128>}, {pipeline_mode = #tpu.pipeline_mode<synchronous>, transform_indices = @transform_3, window_bounds = array<i64: 128, 256>}, {pipeline_mode = #tpu.pipeline_mode<synchronous>, transform_indices = @transform_4, window_bounds = array<i64: 1, 256>}, {transform_indices = @transform_5, window_bounds = array<i64: 8, 256>}]} {
    %c0 = arith.constant 0 : index
    %c0_0 = arith.constant 0 : index
    %0 = vector.load %arg1[%c0, %c0_0] : memref<8x256xf32, #tpu.memory_space<vmem>>, vector<8x256xf32>
    %c0_1 = arith.constant 0 : index
    %c0_2 = arith.constant 0 : index
    %1 = vector.load %arg2[%c0_1, %c0_2] : memref<256x128xf32, #tpu.memory_space<vmem>>, vector<256x128xf32>
    %cst = arith.constant dense<0.000000e+00> : vector<8x128xf32>
    %2 = tpu.matmul %0, %1, %cst {dimension_numbers = #tpu.dot_dimension_numbers<[1], [0], [0], [1], [0, 0, 1, 1], [], []>} : vector<8x256xf32>, vector<256x128xf32>, vector<8x128xf32> -> vector<8x128xf32>
    %c0_3 = arith.constant 0 : index
    %c0_4 = arith.constant 0 : index
    %3 = vector.load %arg3[%c0_3, %c0_4] : memref<1x128xf32, #tpu.memory_space<vmem>>, vector<1x128xf32>
    %4 = vector.broadcast %3 : vector<1x128xf32> to vector<8x128xf32>
    %5 = arith.addf %2, %4 : vector<8x128xf32>
    %6 = arith.negf %5 : vector<8x128xf32>
    %7 = math.exp %6 : vector<8x128xf32>
    %cst_5 = arith.constant 1.000000e+00 : f32
    %8 = vector.broadcast %cst_5 : f32 to vector<8x128xf32>
    %9 = arith.addf %8, %7 : vector<8x128xf32>
    %10 = arith.divf %8, %9 : vector<8x128xf32>
    %c0_6 = arith.constant 0 : index
    %c0_7 = arith.constant 0 : index
    %11 = vector.load %arg4[%c0_6, %c0_7] : memref<128x256xf32, #tpu.memory_space<vmem>>, vector<128x256xf32>
    %cst_8 = arith.constant dense<0.000000e+00> : vector<8x256xf32>
    %12 = tpu.matmul %10, %11, %cst_8 {dimension_numbers = #tpu.dot_dimension_numbers<[1], [0], [0], [1], [0, 0, 1, 1], [], []>} : vector<8x128xf32>, vector<128x256xf32>, vector<8x256xf32> -> vector<8x256xf32>
    %c0_9 = arith.constant 0 : index
    %c0_10 = arith.constant 0 : index
    %13 = vector.load %arg5[%c0_9, %c0_10] : memref<1x256xf32, #tpu.memory_space<vmem>>, vector<1x256xf32>
    %14 = vector.broadcast %13 : vector<1x256xf32> to vector<8x256xf32>
    %15 = arith.addf %12, %14 : vector<8x256xf32>
    %16 = arith.negf %15 : vector<8x256xf32>
    %17 = math.exp %16 : vector<8x256xf32>
    %cst_11 = arith.constant 1.000000e+00 : f32
    %18 = vector.broadcast %cst_11 : f32 to vector<8x256xf32>
    %19 = arith.addf %18, %17 : vector<8x256xf32>
    %20 = arith.divf %18, %19 : vector<8x256xf32>
    %c0_12 = arith.constant 0 : index
    %c0_13 = arith.constant 0 : index
    %21 = vector.load %arg6[%c0_12, %c0_13] : memref<8x256xf32, #tpu.memory_space<vmem>>, vector<8x256xf32>
    tpu.vector_store %arg6[%c0_12, %c0_13], %20 {strides = array<i32>} : memref<8x256xf32, #tpu.memory_space<vmem>>, vector<8x256xf32>,
    return
  }
  func.func @transform_0(%arg0: i32) -> (i32, i32) {
    %c0_i32 = arith.constant 0 : i32
    %c0_i32_0 = arith.constant 0 : i32
    return %arg0, %c0_i32 : i32, i32
  }
  func.func @transform_1(%arg0: i32) -> (i32, i32) {
    %c0_i32 = arith.constant 0 : i32
    %c0_i32_0 = arith.constant 0 : i32
    %c0_i32_1 = arith.constant 0 : i32
    return %c0_i32, %c0_i32_0 : i32, i32
  }
  func.func @transform_2(%arg0: i32) -> (i32, i32) {
    %c0_i32 = arith.constant 0 : i32
    %c0_i32_0 = arith.constant 0 : i32
    %c0_i32_1 = arith.constant 0 : i32
    return %c0_i32, %c0_i32_0 : i32, i32
  }
  func.func @transform_3(%arg0: i32) -> (i32, i32) {
    %c0_i32 = arith.constant 0 : i32
    %c0_i32_0 = arith.constant 0 : i32
    %c0_i32_1 = arith.constant 0 : i32
    return %c0_i32, %c0_i32_0 : i32, i32
  }
  func.func @transform_4(%arg0: i32) -> (i32, i32) {
    %c0_i32 = arith.constant 0 : i32
    %c0_i32_0 = arith.constant 0 : i32
    %c0_i32_1 = arith.constant 0 : i32
    return %c0_i32, %c0_i32_0 : i32, i32
  }
  func.func @transform_5(%arg0: i32) -> (i32, i32) {
    %c0_i32 = arith.constant 0 : i32
    %c0_i32_0 = arith.constant 0 : i32
    return %arg0, %c0_i32 : i32, i32
  }
}

</mosaic_0001>

<bundles_post_ra>
// kernel: tpu_custom_call.1
= control target key start
LH: loop header
LB: loop body
LE: loop exit
PB: predicated region body
PF: predicated region fallthrough
CT: control target
= control target key end

     0   :  { %10 = vsyncpa [#allocation3], 0  ;;  %s481_s0 = inlined_call_operand.hbm [shape: f32[8,256], index: 0, kind: input, shape index: {}]   ;;  %s482_s1 = inlined_call_operand.hbm [shape: f32[256,128], index: 1, kind: input, shape index: {}]   ;;  %s483_s2 = inlined_call_operand.vmem [shape: f32[1,128], index: 2, kind: input, shape index: {}]   ;;  %s484_s3 = inlined_call_operand.hbm [shape: f32[128,256], index: 3, kind: input, shape index: {}]   ;;  %s485_s4 = inlined_call_operand.vmem [shape: f32[1,256], index: 4, kind: input, shape index: {}]   ;;  %s486_s5 = inlined_call_operand.hbm [shape: f32[8,256], index: 5, kind: output, shape index: {}]  }
   0x1   :  { %11 = vsyncpa [#allocation6], 0  ;;  %s28_s20 = sshll.u32 %s482_s1, 4  ;;  %s29_s20 = int_to_ptr.hbm [resolvable:$true] %s28_s20 }
   0x2   :  { %12 = vsyncpa [#allocation4], 0  ;;  %s425_s21 = smov [#allocation5]   ;;  %s18_s25 = sshll.u32 %s481_s0, 4  ;;  %s19_s25 = int_to_ptr.hbm [resolvable:$true] %s18_s25 }
   0x3   :  { %s30_s22 = sshll.u32 %s425_s21, 4  ;;  %s426_s26 = smov 128   ;;  %s31_s22 = int_to_ptr.vmem [resolvable:$true] %s30_s22 }
   0x4   :  { %s427_s27 = smov 8   ;;  %s428_s28 = smov [#allocation2]  }
   0x5   :  { %36 = dma.hbm_to_vmem [thread:$0]  %s29_s20, 4096, %s31_s22, [#allocation6], %s426_s26, %s426_s26, %s427_s27  }
   0x6   :  { %s20_s29 = sshll.u32 %s428_s28, 4  ;;  %s43_s7 = sshll.u32 %s484_s3, 4  ;;  %s21_s29 = int_to_ptr.vmem [resolvable:$true] %s20_s29  ;;  %s44_s7 = int_to_ptr.hbm [resolvable:$true] %s43_s7 }
   0x7   :  { %23 = dma.hbm_to_vmem [thread:$0]  %s19_s25, 256, %s21_s29, [#allocation3]  }
   0x8   :  { %s429_s1 = smov [#allocation7]   ;;  %s430_s9 = smov 256  }
   0x9   :  { %s45_s8 = sshll.u32 %s429_s1, 4  ;;  %s431_s10 = smov 16   ;;  %s46_s8 = int_to_ptr.vmem [resolvable:$true] %s45_s8 }
   0xa   :  { %51 = dma.hbm_to_vmem [thread:$0]  %s44_s7, 4096, %s46_s8, [#allocation6], %s430_s9, %s430_s9, %s431_s10  }
   0xb   :  { %419 = dma.done.wait [#allocation3], 256  }
   0xc   :  { %420 = vsyncadd [#allocation3], 4294967040 }
   0xd   :  { %421 = dma.done.wait [#allocation6], 8192  }
   0xe   :  { %422 = vsyncadd [#allocation6], 4294959104  ;;  %v83_v0 = vld [vmem:[#allocation5 + $0x78] sm:$0xff]  ;;  %v82_v1 = vld [vmem:[#allocation5 + $0x70] sm:$0xff]  ;;  %s288_s15 = sshll.u32 %s486_s5, 4  ;;  %s289_s15 = int_to_ptr.hbm [resolvable:$true] %s288_s15 }
   0xf   :  { %v99_v2 = vld [vmem:[#allocation5 + $0xf8] sm:$0xff]  ;;  %104 = vmatpush.msra.mxu0 %v83_v0  ;;  %v98_v3 = vld [vmem:[#allocation5 + $0xf0] sm:$0xff]  ;;  %v81_v4 = vld [vmem:[#allocation5 + $0x68] sm:$0xff] }
  0x10   :  { %124 = vmatpush.msra.mxu1 %v99_v2  ;;  %v97_v5 = vld [vmem:[#allocation5 + $0xe8] sm:$0xff]  ;;  %v80_v6 = vld [vmem:[#allocation5 + $0x60] sm:$0xff]  ;;  %v79_v8 = vld [vmem:[#allocation5 + $0x58] sm:$0xff] }
  0x11   :  { %105 = vmatpush.msra.mxu0 %v82_v1  ;;  %v96_v7 = vld [vmem:[#allocation5 + $0xe0] sm:$0xff]  ;;  %v95_v9 = vld [vmem:[#allocation5 + $0xd8] sm:$0xff]  ;;  %v78_v10 = vld [vmem:[#allocation5 + $0x50] sm:$0xff] }
  0x12   :  { %125 = vmatpush.msra.mxu1 %v98_v3  ;;  %v94_v11 = vld [vmem:[#allocation5 + $0xd0] sm:$0xff]  ;;  %v77_v12 = vld [vmem:[#allocation5 + $0x48] sm:$0xff]  ;;  %v76_v14 = vld [vmem:[#allocation5 + $0x40] sm:$0xff] }
  0x13   :  { %106 = vmatpush.msra.mxu0 %v81_v4  ;;  %v93_v13 = vld [vmem:[#allocation5 + $0xc8] sm:$0xff]  ;;  %v92_v15 = vld [vmem:[#allocation5 + $0xc0] sm:$0xff]  ;;  %v75_v16 = vld [vmem:[#allocation5 + $0x38] sm:$0xff] }
  0x14   :  { %126 = vmatpush.msra.mxu1 %v97_v5  ;;  %v91_v17 = vld [vmem:[#allocation5 + $0xb8] sm:$0xff]  ;;  %v74_v18 = vld [vmem:[#allocation5 + $0x30] sm:$0xff]  ;;  %v73_v20 = vld [vmem:[#allocation5 + $0x28] sm:$0xff] }
  0x15   :  { %107 = vmatpush.msra.mxu0 %v80_v6  ;;  %v90_v19 = vld [vmem:[#allocation5 + $0xb0] sm:$0xff]  ;;  %v89_v21 = vld [vmem:[#allocation5 + $0xa8] sm:$0xff]  ;;  %v72_v22 = vld [vmem:[#allocation5 + $0x20] sm:$0xff] }
  0x16   :  { %127 = vmatpush.msra.mxu1 %v96_v7  ;;  %v88_v23 = vld [vmem:[#allocation5 + $0xa0] sm:$0xff]  ;;  %v71_v24 = vld [vmem:[#allocation5 + $0x18] sm:$0xff]  ;;  %v70_v26 = vld [vmem:[#allocation5 + $0x10] sm:$0xff] }
  0x17   :  { %108 = vmatpush.msra.mxu0 %v79_v8  ;;  %v87_v25 = vld [vmem:[#allocation5 + $0x98] sm:$0xff]  ;;  %v86_v27 = vld [vmem:[#allocation5 + $0x90] sm:$0xff]  ;;  %v69_v28 = vld [vmem:[#allocation5 + $0x8] sm:$0xff] }
  0x18   :  { %128 = vmatpush.msra.mxu1 %v95_v9  ;;  %v85_v29 = vld [vmem:[#allocation5 + $0x88] sm:$0xff]  ;;  %v68_v30 = vld [vmem:[#allocation5] sm:$0xff]  ;;  %v66_v32 = vld [vmem:[#allocation2] sm:$0xff] }
  0x19   :  { %109 = vmatpush.msra.mxu0 %v78_v10  ;;  %v84_v31 = vld [vmem:[#allocation5 + $0x80] sm:$0xff]  ;;  %v67_v33 = vld [vmem:[#allocation2 + $0x8] sm:$0xff]  ;;  %v193_v34 = vld [vmem:[#allocation7 + $0xf0] sm:$0xff] }
  0x1a   :  { %129 = vmatpush.msra.mxu1 %v94_v11  ;;  %v194_v35 = vld [vmem:[#allocation7 + $0xf8] sm:$0xff]  ;;  %201 = vmatpush.msra.mxu2 %v193_v34  ;;  %v191_v36 = vld [vmem:[#allocation7 + $0xe0] sm:$0xff]  ;;  %v192_v37 = vld [vmem:[#allocation7 + $0xe8] sm:$0xff] }
  0x1b   :  { %110 = vmatpush.msra.mxu0 %v77_v12  ;;  %221 = vmatpush.msra.mxu3 %v194_v35  ;;  %v189_v38 = vld [vmem:[#allocation7 + $0xd0] sm:$0xff]  ;;  %v190_v39 = vld [vmem:[#allocation7 + $0xd8] sm:$0xff]  ;;  %v187_v40 = vld [vmem:[#allocation7 + $0xc0] sm:$0xff] }
  0x1c   :  { %130 = vmatpush.msra.mxu1 %v93_v13  ;;  %202 = vmatpush.msra.mxu2 %v191_v36  ;;  %v188_v41 = vld [vmem:[#allocation7 + $0xc8] sm:$0xff]  ;;  %v185_v42 = vld [vmem:[#allocation7 + $0xb0] sm:$0xff]  ;;  %v186_v43 = vld [vmem:[#allocation7 + $0xb8] sm:$0xff] }
  0x1d   :  { %111 = vmatpush.msra.mxu0 %v76_v14  ;;  %222 = vmatpush.msra.mxu3 %v192_v37  ;;  %v183_v44 = vld [vmem:[#allocation7 + $0xa0] sm:$0xff]  ;;  %v184_v45 = vld [vmem:[#allocation7 + $0xa8] sm:$0xff]  ;;  %v181_v46 = vld [vmem:[#allocation7 + $0x90] sm:$0xff] }
  0x1e   :  { %131 = vmatpush.msra.mxu1 %v92_v15  ;;  %203 = vmatpush.msra.mxu2 %v189_v38  ;;  %v182_v47 = vld [vmem:[#allocation7 + $0x98] sm:$0xff]  ;;  %v179_v48 = vld [vmem:[#allocation7 + $0x80] sm:$0xff]  ;;  %v180_v49 = vld [vmem:[#allocation7 + $0x88] sm:$0xff] }
  0x1f   :  { %112 = vmatpush.msra.mxu0 %v75_v16  ;;  %223 = vmatpush.msra.mxu3 %v190_v39  ;;  %v177_v50 = vld [vmem:[#allocation7 + $0x70] sm:$0xff]  ;;  %v178_v51 = vld [vmem:[#allocation7 + $0x78] sm:$0xff]  ;;  %v175_v52 = vld [vmem:[#allocation7 + $0x60] sm:$0xff] }
  0x20   :  { %132 = vmatpush.msra.mxu1 %v91_v17  ;;  %204 = vmatpush.msra.mxu2 %v187_v40  ;;  %v176_v53 = vld [vmem:[#allocation7 + $0x68] sm:$0xff]  ;;  %v173_v54 = vld [vmem:[#allocation7 + $0x50] sm:$0xff]  ;;  %v174_v55 = vld [vmem:[#allocation7 + $0x58] sm:$0xff] }
  0x21   :  { %113 = vmatpush.msra.mxu0 %v74_v18  ;;  %224 = vmatpush.msra.mxu3 %v188_v41  ;;  %v171_v56 = vld [vmem:[#allocation7 + $0x40] sm:$0xff]  ;;  %v172_v57 = vld [vmem:[#allocation7 + $0x48] sm:$0xff]  ;;  %v169_v58 = vld [vmem:[#allocation7 + $0x30] sm:$0xff] }
  0x22   :  { %133 = vmatpush.msra.mxu1 %v90_v19  ;;  %205 = vmatpush.msra.mxu2 %v185_v42  ;;  %v170_v59 = vld [vmem:[#allocation7 + $0x38] sm:$0xff]  ;;  %v167_v60 = vld [vmem:[#allocation7 + $0x20] sm:$0xff]  ;;  %v168_v61 = vld [vmem:[#allocation7 + $0x28] sm:$0xff] }
  0x23   :  { %114 = vmatpush.msra.mxu0 %v73_v20  ;;  %225 = vmatpush.msra.mxu3 %v186_v43  ;;  %v165_v62 = vld [vmem:[#allocation7 + $0x10] sm:$0xff]  ;;  %v166_v63 = vld [vmem:[#allocation7 + $0x18] sm:$0xff]  ;;  %v163_v1 = vld [vmem:[#allocation7] sm:$0xff] }
  0x24   :  { %134 = vmatpush.msra.mxu1 %v89_v21  ;;  %206 = vmatpush.msra.mxu2 %v183_v44  ;;  %v310_v0 = vld [vmem:[%s483_s2] ss:$0 sm:$0xff]  ;;  %v164_v2 = vld [vmem:[#allocation7 + $0x8] sm:$0xff] }
  0x25   :  { %115 = vmatpush.msra.mxu0 %v72_v22  ;;  %226 = vmatpush.msra.mxu3 %v184_v45  ;;  %v195_v20 = vld [vmem:[%s485_s4] sm:$0x3]  ;;  %s432_s4 = smov [#allocation8]  }
  0x26   :  { %135 = vmatpush.msra.mxu1 %v88_v23  ;;  %207 = vmatpush.msra.mxu2 %v181_v46  ;;  %v197_v21 = vperm.slane %v195_v20, 0  ;;  %v198_v22 = vperm.slane %v195_v20, 1  ;;  %s286_s12 = sshll.u32 %s432_s4, 4  ;;  %s287_s12 = int_to_ptr.vmem [resolvable:$true] %s286_s12 }
  0x27   :  { %116 = vmatpush.msra.mxu0 %v71_v24  ;;  %227 = vmatpush.msra.mxu3 %v182_v47 }
  0x28   :  { %136 = vmatpush.msra.mxu1 %v87_v25  ;;  %208 = vmatpush.msra.mxu2 %v179_v48 }
  0x29   :  { %117 = vmatpush.msra.mxu0 %v70_v26  ;;  %228 = vmatpush.msra.mxu3 %v180_v49 }
  0x2a   :  { %137 = vmatpush.msra.mxu1 %v86_v27  ;;  %209 = vmatpush.msra.mxu2 %v177_v50 }
  0x2b   :  { %118 = vmatpush.msra.mxu0 %v69_v28  ;;  %229 = vmatpush.msra.mxu3 %v178_v51 }
  0x2c   :  { %138 = vmatpush.msra.mxu1 %v85_v29  ;;  %210 = vmatpush.msra.mxu2 %v175_v52 }
  0x2d   :  { %119 = vmatpush.msra.mxu0 %v68_v30  ;;  %230 = vmatpush.msra.mxu3 %v176_v53 }
  0x2e   :  { %139 = vmatpush.msra.mxu1 %v84_v31  ;;  %120 = vmatmul.f32.vlgmr.msra.gmra.mxu0 %v66_v32 }
  0x2f   :  { %140 = vmatmul.f32.vlgmr.msra.gmra.mxu1 %v67_v33  ;;  %211 = vmatpush.msra.mxu2 %v173_v54 }
  0x30   :  { %231 = vmatpush.msra.mxu3 %v174_v55 }
  0x31   :  { %212 = vmatpush.msra.mxu2 %v171_v56 }
  0x32   :  { %232 = vmatpush.msra.mxu3 %v172_v57 }
  0x33   :  { %213 = vmatpush.msra.mxu2 %v169_v58 }
  0x34   :  { %233 = vmatpush.msra.mxu3 %v170_v59 }
  0x35   :  { %214 = vmatpush.msra.mxu2 %v167_v60 }
  0x36   :  { %234 = vmatpush.msra.mxu3 %v168_v61 }
  0x37   :  { %215 = vmatpush.msra.mxu2 %v165_v62 }
  0x38   :  { %235 = vmatpush.msra.mxu3 %v166_v63 }
  0x39   :  { %216 = vmatpush.msra.mxu2 %v163_v1 }
  0x3a   :  { %236 = vmatpush.msra.mxu3 %v164_v2 }
  0xab   :  { %v121_v3 = vpop.f32.mrf.mxu0 }
  0xac   :  { %v141_v4 = vpop.f32.mrf.mxu1  ;;  %v122_v5 = vadd.f32 %v310_v0, %v121_v3 }
  0xae   :  { %v142_v6 = vadd.f32 %v141_v4, %v122_v5 }
  0xb0   :  { %v299_v7 = vmul.f32 -1.442695, %v142_v6 }
  0xb2   :  { %311 = vpow2.f32 %v299_v7 }
  0xb8   :  { %v312_v8 = vpop.eup %311 }
  0xb9   :  { %v147_v9 = vadd.f32 1.0, %v312_v8 }
  0xbb   :  { %313 = vrcp.f32 %v147_v9  ;;  %v159_v13 = vand.u32 2147483648, %v147_v9  ;;  %v157_v15 = vand.u32 2147483647, %v147_v9  ;;  %vm153_vm1 = vweird.f32 %v147_v9 }
  0xbd   :  { %v160_v17 = vor.u32 1.1754944e-38, %v159_v13  ;;  %vm158_vm3 = vcmp.eq.f32.partialorder %v157_v15, 8.507059e+37 }
  0xc1   :  { %v314_v10 = vpop.eup %313 }
  0xc2   :  { %v149_v11 = vmul.f32 %v314_v10, %v147_v9  ;;  %vm154_vm0 = vweird.f32 %v314_v10 }
  0xc3   :  { %vm155_vm2 = vmor %vm153_vm1, %vm154_vm0 }
  0xc4   :  { %v150_v12 = vsub.f32 1.0, %v149_v11 }
  0xc6   :  { %v151_v14 = vmul.f32 %v314_v10, %v150_v12 }
  0xc8   :  { %v152_v16 = vadd.f32 %v314_v10, %v151_v14 }
  0xca   :  { %v156_v18 = vsel %vm155_vm2, %v314_v10, %v152_v16 }
  0xcb   :  { %v161_v19 = vsel %vm158_vm3, %v160_v17, %v156_v18 }
  0xcc   :  { %217 = vmatmul.f32.vlgmr.msra.gmra.mxu2 %v161_v19  ;;  %237 = vmatmul.f32.vlgmr.msra.gmra.mxu3 %v161_v19 }
 0x14f   :  { %v218_v23 = vpop.f32.mrf.mxu2  ;;  %v238_v24 = vpop.f32.mrf.mxu3 }
 0x150   :  { %v219_v25 = vadd.f32 %v218_v23, %v197_v21  ;;  %v239_v26 = vadd.f32 %v238_v24, %v198_v22 }
 0x152   :  { %v300_v27 = vmul.f32 -1.442695, %v219_v25  ;;  %v301_v28 = vmul.f32 -1.442695, %v239_v26 }
 0x154   :  { %315 = vpow2.f32 %v300_v27 }
 0x155   :  { %317 = vpow2.f32 %v301_v28 }
 0x15a   :  { %v316_v29 = vpop.eup %315 }
 0x15b   :  { %v318_v30 = vpop.eup %317  ;;  %v247_v31 = vadd.f32 1.0, %v316_v29 }
 0x15c   :  { %v248_v32 = vadd.f32 1.0, %v318_v30 }
 0x15d   :  { %319 = vrcp.f32 %v247_v31  ;;  %v260_v39 = vand.u32 2147483648, %v247_v31  ;;  %v258_v41 = vand.u32 2147483647, %v247_v31  ;;  %vm254_vm6 = vweird.f32 %v247_v31 }
 0x15e   :  { %321 = vrcp.f32 %v248_v32  ;;  %v275_v42 = vand.u32 2147483648, %v248_v32  ;;  %v273_v44 = vand.u32 2147483647, %v248_v32  ;;  %vm269_vm8 = vweird.f32 %v248_v32 }
 0x15f   :  { %v261_v46 = vor.u32 1.1754944e-38, %v260_v39  ;;  %vm259_vm9 = vcmp.eq.f32.partialorder %v258_v41, 8.507059e+37 }
 0x160   :  { %v276_v49 = vor.u32 1.1754944e-38, %v275_v42  ;;  %vm274_vm11 = vcmp.eq.f32.partialorder %v273_v44, 8.507059e+37 }
 0x163   :  { %v320_v33 = vpop.eup %319 }
 0x164   :  { %v322_v34 = vpop.eup %321  ;;  %v250_v35 = vmul.f32 %v320_v33, %v247_v31  ;;  %vm255_vm4 = vweird.f32 %v320_v33 }
 0x165   :  { %v265_v36 = vmul.f32 %v322_v34, %v248_v32  ;;  %vm270_vm5 = vweird.f32 %v322_v34  ;;  %vm256_vm7 = vmor %vm254_vm6, %vm255_vm4 }
 0x166   :  { %v251_v37 = vsub.f32 1.0, %v250_v35  ;;  %vm271_vm10 = vmor %vm269_vm8, %vm270_vm5 }
 0x167   :  { %v266_v38 = vsub.f32 1.0, %v265_v36 }
 0x168   :  { %v252_v40 = vmul.f32 %v320_v33, %v251_v37 }
 0x169   :  { %v267_v43 = vmul.f32 %v322_v34, %v266_v38 }
 0x16a   :  { %v253_v45 = vadd.f32 %v320_v33, %v252_v40 }
 0x16b   :  { %v268_v47 = vadd.f32 %v322_v34, %v267_v43 }
 0x16c   :  { %v257_v48 = vsel %vm256_vm7, %v320_v33, %v253_v45 }
 0x16d   :  { %v262_v50 = vsel %vm259_vm9, %v261_v46, %v257_v48  ;;  %v272_v51 = vsel %vm271_vm10, %v322_v34, %v268_v47 }
 0x16e   :  { %v277_v52 = vsel %vm274_vm11, %v276_v49, %v272_v51  ;;  %279 = vst [vmem:[#allocation8] sm:$0xff] %v262_v50 }
 0x16f   :  { %280 = vst [vmem:[#allocation8 + $0x8] sm:$0xff] %v277_v52 }
 0x170   :  { %291 = dma.vmem_to_hbm [thread:$0]  %s287_s12, 256, %s289_s15, [#allocation4]  }
 0x171   :  { %423 = dma.done.wait [#allocation4], 256  }
 0x172   :  { %424 = vsyncadd [#allocation4], 4294967040 }
 0x173   :  { %296 = vsyncpa [#allocation3], 1 }
 0x174   :  { %297 = vsyncpa [#allocation6], 1 }
 0x175   :  { %298 = vsyncpa [#allocation4], 1 }

</bundles_post_ra>
